<compile_context>
chip_gen: v7x
topology: tpu7x:2x2x1
jax: 0.10.0
libtpu: 0.0.40
codegen_flags: <defaults>
</compile_context>

<pallas_src>
import functools

import jax
import jax.numpy as jnp
from jax.experimental import pallas as pl
from jax.experimental.pallas import tpu as pltpu

NEG_SLOPE = 0.01   # PyTorch F.leaky_relu default
LANE = 128
SUBLANE = 8


def _leaky_relu(x):
    # one vmul + one vmax on the VPU
    return jnp.maximum(x, NEG_SLOPE * x)


def _round_up(n, m):
    return ((n + m - 1) // m) * m


def qnetwork_kernel(x_ref, w1_ref, b1_ref, w2_ref, b2_ref, w3_ref, b3_ref, o_ref):
    """Feature-major fused MLP: features on sublanes, batch on lanes.

    x_ref:  (state_dim, TB)   f32
    w*_ref: (out, in)         f32  (PyTorch nn.Linear layout)
    b*_ref: (out, 1)          f32  (broadcast along lanes)
    o_ref:  (8, TB)           f32  (action_dim zero-padded to 8 sublanes)
    """
    x = x_ref[...]                                                        # (S, TB)

    h1 = jnp.dot(w1_ref[...], x, preferred_element_type=jnp.float32)     # (64, TB)
    h1 = _leaky_relu(h1 + b1_ref[...])

    h2 = jnp.dot(w2_ref[...], h1, preferred_element_type=jnp.float32)    # (32, TB)
    h2 = _leaky_relu(h2 + b2_ref[...])

    q = jnp.dot(w3_ref[...], h2, preferred_element_type=jnp.float32)     # (8, TB)
    o_ref[...] = (q + b3_ref[...]).astype(o_ref.dtype)


def prepare_params(params):
    """One-time conversion of PyTorch-layout params into kernel layout.

    Input:  (w1 (64,S), b1 (64,), w2 (32,64), b2 (32,), w3 (A,32), b3 (A,))
    Output: same weights f32, biases reshaped to (out,1), fc_out padded to 8 rows.
    """
    w1, b1, w2, b2, w3, b3 = params
    action_dim = w3.shape[0]
    ap = _round_up(action_dim, SUBLANE)
    w3p = jnp.zeros((ap, w3.shape[1]), jnp.float32).at[:action_dim].set(w3)
    b3p = jnp.zeros((ap,), jnp.float32).at[:action_dim].set(b3)
    kparams = (
        w1.astype(jnp.float32), b1.astype(jnp.float32).reshape(-1, 1),
        w2.astype(jnp.float32), b2.astype(jnp.float32).reshape(-1, 1),
        w3p, b3p.reshape(-1, 1),
    )
    return kparams, action_dim


@functools.partial(jax.jit, static_argnames=("action_dim", "tile_b"))
def qnetwork_forward(x, kernel_params, action_dim, *, tile_b=2048):
    """Fused 3-layer MLP forward. x: (batch, state_dim) f32 -> (batch, action_dim) f32."""
    w1, b1, w2, b2, w3p, b3p = kernel_params
    batch, state_dim = x.shape
    h1_dim = w1.shape[0]
    h2_dim = w2.shape[0]
    out_pad = w3p.shape[0]

    # ---- batch tiling: batch lives on the lane axis, so tiles are 128-aligned ----
    padded_b = _round_up(batch, LANE)
    tb = max(LANE, min(_round_up(tile_b, LANE), padded_b))
    # v7x megacore: keep >= 2 grid steps whenever the batch allows it.
    if padded_b >= 2 * LANE:
        tb = min(tb, _round_up(pl.cdiv(padded_b, 2), LANE))
    padded_b = _round_up(padded_b, tb)

    # Batch-on-lanes input: (state_dim, padded_b), f32, lane-dense DMA per tile.
    xt = jnp.pad(x, ((0, padded_b - batch), (0, 0))).T

    def resident(shape):
        # Tiny weight/bias arrays: constant index_map -> VMEM-resident across all tiles.
        return pl.BlockSpec(shape, lambda i: (0, 0))

    grid = (padded_b // tb,)

    out = pl.pallas_call(
        qnetwork_kernel,
        out_shape=jax.ShapeDtypeStruct((out_pad, padded_b), jnp.float32),
        grid=grid,
        in_specs=[
            pl.BlockSpec((state_dim, tb), lambda i: (0, i)),   # x^T: batch-tiled, pipelined
            resident((h1_dim, state_dim)),
            resident((h1_dim, 1)),
            resident((h2_dim, h1_dim)),
            resident((h2_dim, 1)),
            resident((out_pad, h2_dim)),
            resident((out_pad, 1)),
        ],
        out_specs=pl.BlockSpec((out_pad, tb), lambda i: (0, i)),
        compiler_params=pltpu.CompilerParams(
            dimension_semantics=("parallel",),   # shard batch tiles across TCs (v7x)
        ),
    )(xt, w1, b1, w2, b2, w3p, b3p)

    # Padded batch columns hold bias-propagated garbage; slice them off here and
    # never consume them downstream.
    return out[:action_dim, :batch].T


def init_params(key, state_dim, action_dim):
    """Deterministic init mimicking nn.Linear default (uniform +/- 1/sqrt(fan_in)),
    in PyTorch layout: W (out_features, in_features), b (out_features,)."""
    def linear_init(k, fan_in, fan_out):
        kw, kb = jax.random.split(k)
        bound = 1.0 / jnp.sqrt(fan_in)
        w = jax.random.uniform(kw, (fan_out, fan_in), jnp.float32, -bound, bound)
        b = jax.random.uniform(kb, (fan_out,), jnp.float32, -bound, bound)
        return w, b

    k1, k2, k3 = jax.random.split(key, 3)
    w1, b1 = linear_init(k1, state_dim, 64)
    w2, b2 = linear_init(k2, 64, 32)
    w3, b3 = linear_init(k3, 32, action_dim)
    return (w1, b1, w2, b2, w3, b3)


def qnetwork_ref(x, params):
    """Pure-JAX f32 reference mirroring the PyTorch module forward."""
    w1, b1, w2, b2, w3, b3 = params
    h = _leaky_relu(x @ w1.T + b1)
    h = _leaky_relu(h @ w2.T + b2)
    return h @ w3.T + b3


if __name__ == "__main__":
    # Pendulum: state_dim=3 (cos theta, sin theta, theta_dot); discretized actions.
    state_dim, action_dim = 3, 5
    key = jax.random.PRNGKey(0)
    kx, kp, kx2 = jax.random.split(key, 3)
    params = init_params(kp, state_dim, action_dim)
    kparams, adim = prepare_params(params)

    # Small batch (single 128-wide lane tile after padding).
    batch = 8
    x = jax.random.normal(kx, (batch, state_dim), dtype=jnp.float32)
    out = jax.block_until_ready(qnetwork_forward(x, kparams, adim))
    ref = qnetwork_ref(x, params)
    assert out.shape == (batch, action_dim)
    assert jnp.allclose(out, ref, atol=1e-2, rtol=1e-2), "mismatch vs JAX reference (small batch)"

    # Larger ragged batch to exercise the multi-step batch grid + padding path.
    batch2 = 300
    x2 = jax.random.normal(kx2, (batch2, state_dim), dtype=jnp.float32)
    out2 = jax.block_until_ready(qnetwork_forward(x2, kparams, adim, tile_b=256))
    ref2 = qnetwork_ref(x2, params)
    assert out2.shape == (batch2, action_dim)
    assert jnp.allclose(out2, ref2, atol=1e-2, rtol=1e-2), "mismatch vs JAX reference (gridded batch)"

    print("KERNEL_OK")
</pallas_src>

<mosaic_0001>
module attributes {stable_mosaic.version = 11 : i64} {
  func.func @qnetwork_kernel(%arg0: i32, %arg1: memref<3x128xf32, #tpu.memory_space<vmem>>, %arg2: memref<64x3xf32, #tpu.memory_space<vmem>>, %arg3: memref<64x1xf32, #tpu.memory_space<vmem>>, %arg4: memref<32x64xf32, #tpu.memory_space<vmem>>, %arg5: memref<32x1xf32, #tpu.memory_space<vmem>>, %arg6: memref<8x32xf32, #tpu.memory_space<vmem>>, %arg7: memref<8x1xf32, #tpu.memory_space<vmem>>, %arg8: memref<8x128xf32, #tpu.memory_space<vmem>>) attributes {dimension_semantics = [#tpu.dimension_semantics<parallel>], iteration_bounds = array<i64: 1>, scalar_prefetch = 0 : i64, scratch_operands = 0 : i64, tpu.core_type = #tpu.core_type<tc>, window_params = [{transform_indices = @transform_0, window_bounds = array<i64: 3, 128>}, {pipeline_mode = #tpu.pipeline_mode<synchronous>, transform_indices = @transform_1, window_bounds = array<i64: 64, 3>}, {pipeline_mode = #tpu.pipeline_mode<synchronous>, transform_indices = @transform_2, window_bounds = array<i64: 64, 1>}, {pipeline_mode = #tpu.pipeline_mode<synchronous>, transform_indices = @transform_3, window_bounds = array<i64: 32, 64>}, {pipeline_mode = #tpu.pipeline_mode<synchronous>, transform_indices = @transform_4, window_bounds = array<i64: 32, 1>}, {pipeline_mode = #tpu.pipeline_mode<synchronous>, transform_indices = @transform_5, window_bounds = array<i64: 8, 32>}, {pipeline_mode = #tpu.pipeline_mode<synchronous>, transform_indices = @transform_6, window_bounds = array<i64: 8, 1>}, {transform_indices = @transform_7, window_bounds = array<i64: 8, 128>}]} {
    %c0 = arith.constant 0 : index
    %c0_0 = arith.constant 0 : index
    %0 = vector.load %arg1[%c0, %c0_0] : memref<3x128xf32, #tpu.memory_space<vmem>>, vector<3x128xf32>
    %c0_1 = arith.constant 0 : index
    %c0_2 = arith.constant 0 : index
    %1 = vector.load %arg2[%c0_1, %c0_2] : memref<64x3xf32, #tpu.memory_space<vmem>>, vector<64x3xf32>
    %cst = arith.constant dense<0.000000e+00> : vector<64x128xf32>
    %2 = tpu.matmul %1, %0, %cst {dimension_numbers = #tpu.dot_dimension_numbers<[1], [0], [0], [1], [0, 0, 1, 1], [], []>} : vector<64x3xf32>, vector<3x128xf32>, vector<64x128xf32> -> vector<64x128xf32>
    %c0_3 = arith.constant 0 : index
    %c0_4 = arith.constant 0 : index
    %3 = vector.load %arg3[%c0_3, %c0_4] : memref<64x1xf32, #tpu.memory_space<vmem>>, vector<64x1xf32>
    %4 = vector.broadcast %3 : vector<64x1xf32> to vector<64x128xf32>
    %5 = arith.addf %2, %4 : vector<64x128xf32>
    %cst_5 = arith.constant 0.00999999977 : f32
    %6 = vector.broadcast %cst_5 : f32 to vector<64x128xf32>
    %7 = arith.mulf %6, %5 : vector<64x128xf32>
    %8 = arith.maximumf %5, %7 : vector<64x128xf32>
    %c0_6 = arith.constant 0 : index
    %c0_7 = arith.constant 0 : index
    %9 = vector.load %arg4[%c0_6, %c0_7] : memref<32x64xf32, #tpu.memory_space<vmem>>, vector<32x64xf32>
    %cst_8 = arith.constant dense<0.000000e+00> : vector<32x128xf32>
    %10 = tpu.matmul %9, %8, %cst_8 {dimension_numbers = #tpu.dot_dimension_numbers<[1], [0], [0], [1], [0, 0, 1, 1], [], []>} : vector<32x64xf32>, vector<64x128xf32>, vector<32x128xf32> -> vector<32x128xf32>
    %c0_9 = arith.constant 0 : index
    %c0_10 = arith.constant 0 : index
    %11 = vector.load %arg5[%c0_9, %c0_10] : memref<32x1xf32, #tpu.memory_space<vmem>>, vector<32x1xf32>
    %12 = vector.broadcast %11 : vector<32x1xf32> to vector<32x128xf32>
    %13 = arith.addf %10, %12 : vector<32x128xf32>
    %cst_11 = arith.constant 0.00999999977 : f32
    %14 = vector.broadcast %cst_11 : f32 to vector<32x128xf32>
    %15 = arith.mulf %14, %13 : vector<32x128xf32>
    %16 = arith.maximumf %13, %15 : vector<32x128xf32>
    %c0_12 = arith.constant 0 : index
    %c0_13 = arith.constant 0 : index
    %17 = vector.load %arg6[%c0_12, %c0_13] : memref<8x32xf32, #tpu.memory_space<vmem>>, vector<8x32xf32>
    %cst_14 = arith.constant dense<0.000000e+00> : vector<8x128xf32>
    %18 = tpu.matmul %17, %16, %cst_14 {dimension_numbers = #tpu.dot_dimension_numbers<[1], [0], [0], [1], [0, 0, 1, 1], [], []>} : vector<8x32xf32>, vector<32x128xf32>, vector<8x128xf32> -> vector<8x128xf32>
    %c0_15 = arith.constant 0 : index
    %c0_16 = arith.constant 0 : index
    %19 = vector.load %arg7[%c0_15, %c0_16] : memref<8x1xf32, #tpu.memory_space<vmem>>, vector<8x1xf32>
    %20 = vector.broadcast %19 : vector<8x1xf32> to vector<8x128xf32>
    %21 = arith.addf %18, %20 : vector<8x128xf32>
    %c0_17 = arith.constant 0 : index
    %c0_18 = arith.constant 0 : index
    %22 = vector.load %arg8[%c0_17, %c0_18] : memref<8x128xf32, #tpu.memory_space<vmem>>, vector<8x128xf32>
    tpu.vector_store %arg8[%c0_17, %c0_18], %21 {strides = array<i32>} : memref<8x128xf32, #tpu.memory_space<vmem>>, vector<8x128xf32>,
    return
  }
  func.func @transform_0(%arg0: i32) -> (i32, i32) {
    %c0_i32 = arith.constant 0 : i32
    %c0_i32_0 = arith.constant 0 : i32
    return %c0_i32, %arg0 : i32, i32
  }
  func.func @transform_1(%arg0: i32) -> (i32, i32) {
    %c0_i32 = arith.constant 0 : i32
    %c0_i32_0 = arith.constant 0 : i32
    %c0_i32_1 = arith.constant 0 : i32
    return %c0_i32, %c0_i32_0 : i32, i32
  }
  func.func @transform_2(%arg0: i32) -> (i32, i32) {
    %c0_i32 = arith.constant 0 : i32
    %c0_i32_0 = arith.constant 0 : i32
    %c0_i32_1 = arith.constant 0 : i32
    return %c0_i32, %c0_i32_0 : i32, i32
  }
  func.func @transform_3(%arg0: i32) -> (i32, i32) {
    %c0_i32 = arith.constant 0 : i32
    %c0_i32_0 = arith.constant 0 : i32
    %c0_i32_1 = arith.constant 0 : i32
    return %c0_i32, %c0_i32_0 : i32, i32
  }
  func.func @transform_4(%arg0: i32) -> (i32, i32) {
    %c0_i32 = arith.constant 0 : i32
    %c0_i32_0 = arith.constant 0 : i32
    %c0_i32_1 = arith.constant 0 : i32
    return %c0_i32, %c0_i32_0 : i32, i32
  }
  func.func @transform_5(%arg0: i32) -> (i32, i32) {
    %c0_i32 = arith.constant 0 : i32
    %c0_i32_0 = arith.constant 0 : i32
    %c0_i32_1 = arith.constant 0 : i32
    return %c0_i32, %c0_i32_0 : i32, i32
  }
  func.func @transform_6(%arg0: i32) -> (i32, i32) {
    %c0_i32 = arith.constant 0 : i32
    %c0_i32_0 = arith.constant 0 : i32
    %c0_i32_1 = arith.constant 0 : i32
    return %c0_i32, %c0_i32_0 : i32, i32
  }
  func.func @transform_7(%arg0: i32) -> (i32, i32) {
    %c0_i32 = arith.constant 0 : i32
    %c0_i32_0 = arith.constant 0 : i32
    return %c0_i32, %arg0 : i32, i32
  }
}

</mosaic_0001>

<bundles_post_ra>
// kernel: qnetwork_forward.1
= control target key start
LH: loop header
LB: loop body
LE: loop exit
PB: predicated region body
PF: predicated region fallthrough
CT: control target
= control target key end

     0   :  { %vm108_vm0 = vcmask 1042432   ;;  %vm83_vm1 = vcmask 23552   ;;  %v568_v3 = vmov 0   ;;  %vm261_vm2 = vcmask 523264   ;;  %s708_s0 = inlined_call_operand.vmem [shape: f32[3,128], index: 0, kind: input, shape index: {}]   ;;  %s709_s1 = inlined_call_operand.vmem [shape: f32[64,3], index: 1, kind: input, shape index: {}]   ;;  %s710_s2 = inlined_call_operand.vmem [shape: f32[64,1], index: 2, kind: input, shape index: {}]   ;;  %s711_s4 = inlined_call_operand.vmem [shape: f32[32,1], index: 4, kind: input, shape index: {}]   ;;  %s712_s6 = inlined_call_operand.vmem [shape: f32[8,1], index: 6, kind: input, shape index: {}]   ;;  %s713_s3 = inlined_call_operand.vmem [shape: f32[32,64], index: 3, kind: input, shape index: {}]   ;;  %s714_s5 = inlined_call_operand.vmem [shape: f32[8,32], index: 5, kind: input, shape index: {}]   ;;  %s715_s7 = inlined_call_operand.vmem [shape: f32[8,128], index: 7, kind: output, shape index: {}]  }
   0x1   :  { %v26_v0 = vld [vmem:[%s708_s0] sm:$0x7]  ;;  %v28_v2 = vld [vmem:[%s709_s1 + $0x8] sm:$0xff]  ;;  %566 = vset.pattern.permute.xlu0 %v568_v3  ;;  %567 = vset.pattern.permute.xlu1 %v568_v3  ;;  %v29_v4 = vld [vmem:[%s709_s1 + $0x10] sm:$0xff]  ;;  %vm570_vm3 = vmmov 0   ;;  %vm374_vm4 = vcmask 261120  }
   0x2   :  { %v27_v1 = vld [vmem:[%s709_s1] sm:$0xff]  ;;  %493 = vmatprep.subr.msk.mxu0 %vm108_vm0, %v26_v0  ;;  %v37_v6 = vld [vmem:[%s710_s2 + $0x10] sm:$0xff]  ;;  %v30_v7 = vld [vmem:[%s709_s1 + $0x18] sm:$0xff] }
   0x3   :  { %495 = vmatprep.mubr.msk.f32.mxu0 %vm83_vm1, %v27_v1  ;;  %494 = vmatpush3.msk.msra.mxu0 %vm108_vm0, %v26_v0  ;;  %v35_v5 = vld [vmem:[%s710_s2] sm:$0xff]  ;;  %v36_v9 = vld [vmem:[%s710_s2 + $0x8] sm:$0xff]  ;;  %v38_v10 = vld [vmem:[%s710_s2 + $0x18] sm:$0xff] }
   0x4   :  { %496 = vmatmul.mubr.msk.f32.vlgmr.msra.gmra.mrb[0].mxu0 %vm83_vm1, %v28_v2  ;;  %45 = vperm.xlu0 %566, %v35_v5   ;;  %v31_v8 = vld [vmem:[%s709_s1 + $0x20] sm:$0xff]  ;;  %v32_v11 = vld [vmem:[%s709_s1 + $0x28] sm:$0xff]  ;;  %v33_v12 = vld [vmem:[%s709_s1 + $0x30] sm:$0xff] }
   0x5   :  { %498 = vmatprep.mubr.msk.f32.mxu0 %vm83_vm1, %v29_v4  ;;  %55 = vperm.xlu1 %567, %v37_v6   ;;  %v39_v13 = vld [vmem:[%s710_s2 + $0x20] sm:$0xff]  ;;  %v40_v14 = vld [vmem:[%s710_s2 + $0x28] sm:$0xff]  ;;  %v34_v15 = vld [vmem:[%s709_s1 + $0x38] sm:$0xff] }
   0x6   :  { %v41_v16 = vld [vmem:[%s710_s2 + $0x30] sm:$0xff]  ;;  %v42_v17 = vld [vmem:[%s710_s2 + $0x38] sm:$0xff]  ;;  %v237_v18 = vld [vmem:[%s711_s4] sm:$0xff] }
   0x7   :  { %v238_v19 = vld [vmem:[%s711_s4 + $0x8] sm:$0xff]  ;;  %v239_v20 = vld [vmem:[%s711_s4 + $0x10] sm:$0xff]  ;;  %v240_v21 = vld [vmem:[%s711_s4 + $0x18] sm:$0xff] }
   0x8   :  { %499 = vmatmul.mubr.msk.f32.gmra.mrb[2].mxu0 %vm83_vm1, %v30_v7  ;;  %50 = vperm.xlu0 %566, %v36_v9   ;;  %v368_v22 = vld [vmem:[%s712_s6] sm:$0xff]  ;;  %v234_v4 = vld [vmem:[%s713_s3 + $0x8] sm:$0xff]  ;;  %v235_v5 = vld [vmem:[%s713_s3 + $0x10] sm:$0xff]  ;;  %v569_v7 = vmov 0.0|0.0  }
   0x9   :  { %501 = vmatprep.mubr.msk.f32.mxu0 %vm83_vm1, %v31_v8  ;;  %60 = vperm.xlu1 %567, %v38_v10   ;;  %v233_v23 = vld [vmem:[%s713_s3] sm:$0xff]  ;;  %v236_v6 = vld [vmem:[%s713_s3 + $0x18] sm:$0xff]  ;;  %v571_v8 = vmov 0.0  }
   0xa   :  { %523 = vmatprep.mubr.msk.f32.mxu1 %vm261_vm2, %v233_v23  ;;  %556 = vmatprep.subr.bf16.mxu0 %v569_v7 }
   0xc   :  { %502 = vmatmul.mubr.msk.f32.gmra.mrb[4].mxu0 %vm83_vm1, %v32_v11  ;;  %65 = vperm.xlu0 %566, %v39_v13  }
   0xd   :  { %504 = vmatprep.mubr.msk.f32.mxu0 %vm83_vm1, %v33_v12  ;;  %70 = vperm.xlu1 %567, %v40_v14  }
  0x10   :  { %505 = vmatmul.mubr.msk.f32.gmra.mrb[6].mxu0 %vm83_vm1, %v34_v15  ;;  %75 = vperm.xlu0 %566, %v41_v16  }
  0x11   :  { %80 = vperm.xlu1 %567, %v42_v17   ;;  %537 = vmatprep.mubr.msk.f32.mxu0 %vm570_vm3, %v571_v8 }
  0x14   :  { %243 = vperm.xlu0 %566, %v237_v18  }
  0x15   :  { %248 = vperm.xlu1 %567, %v238_v19  }
  0x18   :  { %253 = vperm.xlu0 %566, %v239_v20  }
  0x19   :  { %258 = vperm.xlu1 %567, %v240_v21  }
  0x1c   :  { %371 = vperm.xlu0 %566, %v368_v22  }
  0x83   :  { %v46_v24 = vpop.permute.xlu0 %45 }
  0x84   :  { %v56_v25 = vpop.permute.xlu1 %55 }
  0x87   :  { %v51_v26 = vpop.permute.xlu0 %50 }
  0x88   :  { %v61_v27 = vpop.permute.xlu1 %60 }
  0x8b   :  { %v66_v41 = vpop.permute.xlu0 %65 }
  0x8c   :  { %v71_v38 = vpop.permute.xlu1 %70 }
  0x8f   :  { %v76_v56 = vpop.permute.xlu0 %75 }
  0x90   :  { %v81_v52 = vpop.permute.xlu1 %80 }
  0x93   :  { %v244_v10 = vpop.permute.xlu0 %243 }
  0x94   :  { %v249_v9 = vpop.permute.xlu1 %248 }
  0x97   :  { %v254_v19 = vpop.permute.xlu0 %253 }
  0x98   :  { %v259_v16 = vpop.permute.xlu1 %258 }
  0xd7   :  { %v497_v28 = vpop.f32.mrb[0].mxu0 }
  0xd8   :  { %v184_v29 = vadd.f32 %v497_v28, %v51_v26  ;;  %v178_v30 = vpop.f32.mrb[1].mxu0 }
  0xd9   :  { %v179_v31 = vadd.f32 %v178_v30, %v46_v24 }
  0xda   :  { %v218_v32 = vmul.f32 0.01, %v184_v29 }
  0xdb   :  { %v217_v33 = vmul.f32 0.01, %v179_v31  ;;  %v500_v34 = vpop.f32.mrb[2].mxu0 }
  0xdc   :  { %v226_v35 = vmax.f32 %v184_v29, %v218_v32  ;;  %v194_v36 = vadd.f32 %v500_v34, %v61_v27  ;;  %v188_v37 = vpop.f32.mrb[3].mxu0  ;;  %v372_v32 = vpop.permute.xlu0 %371 }
  0xdd   :  { %v225_v39 = vmax.f32 %v179_v31, %v217_v33  ;;  %v189_v40 = vadd.f32 %v188_v37, %v56_v25  ;;  %v367_v31 = vld [vmem:[%s714_s5] sm:$0xff] }
  0xde   :  { %v220_v42 = vmul.f32 0.01, %v194_v36 }
  0xdf   :  { %v219_v43 = vmul.f32 0.01, %v189_v40  ;;  %v503_v44 = vpop.f32.mrb[4].mxu0  ;;  %v540_v45 = vpack.c.bf16 %v226_v35, %v225_v39 }
  0xe0   :  { %v228_v46 = vmax.f32 %v194_v36, %v220_v42  ;;  %v204_v47 = vadd.f32 %v503_v44, %v71_v38  ;;  %v198_v48 = vpop.f32.mrb[5].mxu0 }
  0xe1   :  { %v227_v49 = vmax.f32 %v189_v40, %v219_v43  ;;  %v199_v50 = vadd.f32 %v198_v48, %v66_v41  ;;  %541 = vmatprep.subr.bf16.mxu1 %v540_v45 }
  0xe2   :  { %v222_v51 = vmul.f32 0.01, %v204_v47  ;;  %543 = vmatpush3.bf16.msra.mxu1 %v540_v45 }
  0xe3   :  { %v221_v53 = vmul.f32 0.01, %v199_v50  ;;  %v506_v54 = vpop.f32.mrb[6].mxu0  ;;  %v544_v55 = vpack.c.bf16 %v228_v46, %v227_v49 }
  0xe4   :  { %v230_v57 = vmax.f32 %v204_v47, %v222_v51  ;;  %v214_v58 = vadd.f32 %v506_v54, %v81_v52  ;;  %v208_v59 = vpop.f32.mrb[7].mxu0 }
  0xe5   :  { %v229_v60 = vmax.f32 %v199_v50, %v221_v53  ;;  %v209_v61 = vadd.f32 %v208_v59, %v76_v56  ;;  %545 = vmatprep.subr.bf16.mxu1 %v544_v55 }
  0xe6   :  { %v224_v62 = vmul.f32 0.01, %v214_v58  ;;  %547 = vmatpush3.bf16.msra.mxu1 %v544_v55 }
  0xe7   :  { %v223_v63 = vmul.f32 0.01, %v209_v61  ;;  %v548_v0 = vpack.c.bf16 %v230_v57, %v229_v60 }
  0xe8   :  { %v232_v1 = vmax.f32 %v214_v58, %v224_v62 }
  0xe9   :  { %v231_v2 = vmax.f32 %v209_v61, %v223_v63  ;;  %549 = vmatprep.subr.bf16.mxu1 %v548_v0 }
  0xea   :  { %551 = vmatpush3.bf16.msra.mxu1 %v548_v0 }
  0xeb   :  { %v552_v3 = vpack.c.bf16 %v232_v1, %v231_v2 }
  0xed   :  { %553 = vmatprep.subr.bf16.mxu1 %v552_v3 }
  0xee   :  { %555 = vmatpush3.bf16.msra.mxu1 %v552_v3 }
  0xf1   :  { %524 = vmatmul.mubr.msk.f32.vlgmr.msra.gmra.mrb[0].mxu1 %vm261_vm2, %v234_v4 }
  0xf2   :  { %526 = vmatprep.mubr.msk.f32.mxu1 %vm261_vm2, %v235_v5 }
  0xf5   :  { %527 = vmatmul.mubr.msk.f32.gmra.mrb[2].mxu1 %vm261_vm2, %v236_v6 }
 0x1c4   :  { %v525_v11 = vpop.f32.mrb[0].mxu1 }
 0x1c5   :  { %v346_v12 = vadd.f32 %v525_v11, %v249_v9  ;;  %v340_v13 = vpop.f32.mrb[1].mxu1 }
 0x1c6   :  { %v341_v14 = vadd.f32 %v340_v13, %v244_v10 }
 0x1c7   :  { %v360_v15 = vmul.f32 0.01, %v346_v12 }
 0x1c8   :  { %v359_v17 = vmul.f32 0.01, %v341_v14  ;;  %v528_v18 = vpop.f32.mrb[2].mxu1 }
 0x1c9   :  { %v364_v20 = vmax.f32 %v346_v12, %v360_v15  ;;  %v356_v21 = vadd.f32 %v528_v18, %v259_v16  ;;  %v350_v22 = vpop.f32.mrb[3].mxu1 }
 0x1ca   :  { %v363_v23 = vmax.f32 %v341_v14, %v359_v17  ;;  %v351_v24 = vadd.f32 %v350_v22, %v254_v19 }
 0x1cb   :  { %v362_v25 = vmul.f32 0.01, %v356_v21 }
 0x1cc   :  { %v557_v26 = vpack.c.bf16 %v364_v20, %v363_v23  ;;  %v361_v27 = vmul.f32 0.01, %v351_v24 }
 0x1cd   :  { %v366_v28 = vmax.f32 %v356_v21, %v362_v25 }
 0x1ce   :  { %v365_v29 = vmax.f32 %v351_v24, %v361_v27  ;;  %558 = vmatpush3.bf16.msra.mxu0 %v557_v26 }
 0x1cf   :  { %559 = vmatprep.subr.bf16.mxu0 %v569_v7 }
 0x1d0   :  { %v560_v30 = vpack.c.bf16 %v366_v28, %v365_v29 }
 0x1d2   :  { %561 = vmatpush3.bf16.msra.mxu0 %v560_v30 }
 0x1d5   :  { %538 = vmatmul.mubr.msk.f32.vlgmr.msra.gmra.mrb[8].mxu0 %vm374_vm4, %v367_v31 }
 0x2a8   :  { %v444_v33 = vpop.f32.mrb[8].mxu0 }
 0x2a9   :  { %v445_v34 = vadd.f32 %v444_v33, %v372_v32  ;;  %v539_v35 = vpop.f32.mrb[9].mxu0 }
 0x2ab   :  { %448 = vst [vmem:[%s715_s7] sm:$0xff] %v445_v34 }

</bundles_post_ra>
